<compile_context>
chip_gen: v7x
topology: tpu7x:2x2x1
jax: 0.10.0
libtpu: 0.0.40
codegen_flags: <defaults>
</compile_context>

<pallas_src>
import functools

import jax
import jax.numpy as jnp
from jax.experimental import pallas as pl
from jax.experimental.pallas import tpu as pltpu

_INV_SQRT2 = 0.7071067811865476


def _gelu_exact(x):
    # torch.nn.functional.gelu default = exact (erf-based) GELU, evaluated in f32.
    return 0.5 * x * (1.0 + jax.lax.erf(x * _INV_SQRT2))


def _mlp_conv_kernel(x_ref, w1_ref, b1_ref, w2_ref, b2_ref, o_ref, *,
                     use_residual, approximate_gelu, block_b):
    # Per-tile shapes (NCL layout):
    #   x_ref : (Bblk, C_in, TL)   w1_ref: (H, C_in)   b1_ref: (H, 1)
    #   w2_ref: (C_out, H)         b2_ref: (C_out, 1)  o_ref : (Bblk, C_out, TL)
    w1 = w1_ref[...]
    w2 = w2_ref[...]
    b1 = b1_ref[...].astype(jnp.float32)
    b2 = b2_ref[...].astype(jnp.float32)

    # Small compile-time-unrolled loop over the batch rows in this block; each
    # row is a clean 2-D MXU matmul with the L tile on the lane axis.
    for b in range(block_b):
        x = x_ref[b]  # (C_in, TL), native dtype straight into the MXU

        h = jnp.dot(w1, x, preferred_element_type=jnp.float32) + b1
        if approximate_gelu:
            # Opt-in: tanh GELU lowers to the EUP slot (frees VALU on v6e/v7x),
            # numerically differs slightly from PyTorch's exact GELU.
            h = jax.nn.gelu(h, approximate=True)
        else:
            h = _gelu_exact(h)  # f32 elementwise, matches PyTorch default

        # Intermediate is rounded to the weight dtype before the 2nd matmul
        # (matches PyTorch when the whole module runs in bf16; no-op for f32).
        y = jnp.dot(w2, h.astype(w2.dtype), preferred_element_type=jnp.float32) + b2

        if use_residual:
            # Only taken when C_out == C_in (same check PyTorch does on shapes).
            y = y + x.astype(jnp.float32)

        o_ref[b] = y.astype(o_ref.dtype)


def _vmem_capacity_bytes():
    """Per-core VMEM capacity; falls back to the smallest (v7x, 64 MiB)."""
    try:
        cap = int(pltpu.get_tpu_info().vmem_capacity_bytes)
        if cap > 0:
            return cap
    except Exception:
        pass
    return 64 * 2**20


def _divisors(n):
    return [d for d in range(1, n + 1) if n % d == 0]


def _live_vmem_bytes(block_b, tile_l, c_in, c_out, h, x_isz, o_isz, w_isz, weight_bufs):
    """Conservative live-set estimate for one grid step."""
    x_tiles = 2 * block_b * c_in * tile_l * x_isz            # double-buffered input tile
    o_tiles = 2 * block_b * c_out * tile_l * o_isz           # double-buffered output tile
    inter = 3 * block_b * h * tile_l * 4                     # f32 h / y / GELU temporaries
    weights = weight_bufs * (h * c_in + c_out * h + h + c_out) * w_isz
    return x_tiles + o_tiles + inter + weights


def _choose_tiles(B, L_pad, c_in, c_out, h, x_isz, o_isz, w_isz,
                  live_budget, weight_bufs, dma_target=4 * 2**20, max_block_b=8):
    """Pick (block_b, tile_l) from a bytes budget.

    tile_l: largest lane-dense divisor of L_pad whose live VMEM fits the budget
    and keeps the grid >= 2 (when >= 2 steps are possible) so both v7x cores work.
    block_b: grown afterwards until the per-step DMA payload reaches dma_target,
    under the same VMEM / grid constraints.
    """
    n128 = L_pad // 128
    tl_cands = sorted({d * 128 for d in _divisors(n128)}, reverse=True)
    max_steps = B * n128
    min_grid = 2 if max_steps >= 2 else 1

    def fits(bb, tl):
        return _live_vmem_bytes(bb, tl, c_in, c_out, h, x_isz, o_isz, w_isz,
                                weight_bufs) <= live_budget

    def grid_size(bb, tl):
        return (B // bb) * (L_pad // tl)

    tile_l = None
    for tl in tl_cands:
        if fits(1, tl) and grid_size(1, tl) >= min_grid:
            tile_l = tl
            break
    if tile_l is None:
        # Extremely large H: nothing fits the budget; take the smallest lane-dense
        # tile and let the caller raise vmem_limit (see large-channel TODO).
        tile_l = tl_cands[-1]

    block_b = 1
    for bb in _divisors(B):
        if bb > max_block_b:
            break
        if not fits(bb, tile_l) or grid_size(bb, tile_l) < min_grid:
            break
        block_b = bb
        step_bytes = bb * (c_in * x_isz + c_out * o_isz) * tile_l
        if step_bytes >= dma_target:
            break
    return block_b, tile_l


def mlp_conv_forward(x_ncl, w1, b1, w2, b2, *, use_residual=False,
                     approximate_gelu=False):
    """x_ncl: (B, C_in, L).  w1: (H, C_in, 1), b1: (H,), w2: (C_out, H, 1), b2: (C_out,)."""
    B, C_in, L = x_ncl.shape
    H = w1.shape[0]
    C_out = w2.shape[0]

    # PyTorch adds the residual only when output shape == input shape.
    residual_ok = bool(use_residual) and (C_out == C_in)

    # Pad L up to a multiple of 128 so every tile is lane-dense; slice back at the end.
    L_pad = ((L + 127) // 128) * 128
    x_in = x_ncl if L_pad == L else jnp.pad(x_ncl, ((0, 0), (0, 0), (0, L_pad - L)))

    x_isz = jnp.dtype(x_ncl.dtype).itemsize
    o_isz = x_isz
    w_isz = jnp.dtype(w1.dtype).itemsize

    weight_bytes = (H * C_in + C_out * H + H + C_out) * w_isz
    single_buffer_weights = weight_bytes > (512 * 1024)
    weight_bufs = 1 if single_buffer_weights else 2

    vmem_cap = _vmem_capacity_bytes()
    live_budget = vmem_cap // 3  # ~21 MiB on v7x (64 MiB), ~42 MiB on v5e/v6e (128 MiB)

    block_b, tile_l = _choose_tiles(B, L_pad, C_in, C_out, H, x_isz, o_isz, w_isz,
                                    live_budget, weight_bufs)
    grid = (B // block_b, L_pad // tile_l)

    # Conv1d(kernel=1) weights -> plain matmul weights (no transpose needed in NCL).
    w1_m = w1[:, :, 0]            # (H, C_in)
    w2_m = w2[:, :, 0]            # (C_out, H)
    b1_m = b1.reshape(H, 1)
    b2_m = b2.reshape(C_out, 1)

    live_est = _live_vmem_bytes(block_b, tile_l, C_in, C_out, H, x_isz, o_isz,
                                w_isz, weight_bufs)
    vmem_limit = int(min(vmem_cap * 7 // 8, max(4 * 2**20, 2 * live_est)))

    M = B * L
    cost = pl.CostEstimate(
        flops=2 * M * (C_in * H + H * C_out),
        # Advisory only: exact-erf GELU actually lowers to a VALU polynomial.
        transcendentals=M * H,
        bytes_accessed=M * (C_in + C_out) * x_isz + weight_bytes,
    )

    kernel = functools.partial(_mlp_conv_kernel, use_residual=residual_ok,
                               approximate_gelu=approximate_gelu, block_b=block_b)

    def _const_spec(shape):
        # Constant (revisited-every-step) weight/bias block; single-buffer it once
        # it is big enough for double buffering to matter on v7x's 64 MiB VMEM.
        index_map = lambda b, l: (0, 0)
        if single_buffer_weights:
            try:
                return pl.BlockSpec(shape, index_map, pipeline_mode=pl.Buffered(1))
            except TypeError:
                pass
        return pl.BlockSpec(shape, index_map)

    out = pl.pallas_call(
        kernel,
        out_shape=jax.ShapeDtypeStruct((B, C_out, L_pad), x_ncl.dtype),
        grid_spec=pltpu.PrefetchScalarGridSpec(
            num_scalar_prefetch=0,
            grid=grid,
            in_specs=[
                pl.BlockSpec((block_b, C_in, tile_l), lambda b, l: (b, 0, l)),
                _const_spec((H, C_in)),
                _const_spec((H, 1)),
                _const_spec((C_out, H)),
                _const_spec((C_out, 1)),
            ],
            out_specs=pl.BlockSpec((block_b, C_out, tile_l), lambda b, l: (b, 0, l)),
        ),
        compiler_params=pltpu.CompilerParams(
            dimension_semantics=("parallel", "parallel"),
            vmem_limit_bytes=vmem_limit,
        ),
        cost_estimate=cost,
    )(x_in, w1_m, b1_m, w2_m, b2_m)

    if L_pad != L:
        out = out[:, :, :L]
    return out


def _reference_forward(x_ncl, w1, b1, w2, b2, *, use_residual=False):
    # Pure-JAX reference matching the PyTorch forward (n_layers=2, dropout=0.0).
    h = jnp.einsum("hc,bcl->bhl", w1[:, :, 0], x_ncl) + b1[None, :, None]
    h = 0.5 * h * (1.0 + jax.lax.erf(h / jnp.sqrt(2.0)))
    y = jnp.einsum("oh,bhl->bol", w2[:, :, 0], h) + b2[None, :, None]
    if use_residual and y.shape == x_ncl.shape:
        y = y + x_ncl
    return y


if __name__ == "__main__":
    # Module config: MLP_conv(in_channels=4, hidden_channels=32, n_layers=2,
    #                         use_residual=True, dropout=0.0)
    # dropout=0.0 => dropout ModuleList is None (no-op); exact-erf GELU.
    B, C_in, L = 2, 4, 256
    H = 32
    C_out = C_in
    use_residual = True

    key = jax.random.PRNGKey(0)
    kx, k1, k2, k3, k4 = jax.random.split(key, 5)

    x = jax.random.normal(kx, (B, C_in, L), dtype=jnp.float32)
    # Conv1d weight layout: (C_out_layer, C_in_layer, kernel=1)
    w1 = 0.1 * jax.random.normal(k1, (H, C_in, 1), dtype=jnp.float32)
    b1 = 0.1 * jax.random.normal(k2, (H,), dtype=jnp.float32)
    w2 = 0.1 * jax.random.normal(k3, (C_out, H, 1), dtype=jnp.float32)
    b2 = 0.1 * jax.random.normal(k4, (C_out,), dtype=jnp.float32)

    out = mlp_conv_forward(x, w1, b1, w2, b2, use_residual=use_residual)
    out = jax.block_until_ready(out)

    ref = _reference_forward(x, w1, b1, w2, b2, use_residual=use_residual)
    assert out.shape == (B, C_out, L)
    assert jnp.allclose(out, ref, atol=1e-5, rtol=1e-5), "mismatch vs reference"

    print("KERNEL_OK")
</pallas_src>

<mosaic_0001>
module attributes {stable_mosaic.version = 11 : i64} {
  func.func @_mlp_conv_kernel(%arg0: i32, %arg1: i32, %arg2: memref<1x4x256xf32, #tpu.memory_space<vmem>>, %arg3: memref<32x4xf32, #tpu.memory_space<vmem>>, %arg4: memref<32x1xf32, #tpu.memory_space<vmem>>, %arg5: memref<4x32xf32, #tpu.memory_space<vmem>>, %arg6: memref<4x1xf32, #tpu.memory_space<vmem>>, %arg7: memref<1x4x256xf32, #tpu.memory_space<vmem>>) attributes {dimension_semantics = [#tpu.dimension_semantics<parallel>, #tpu.dimension_semantics<parallel>], iteration_bounds = array<i64: 2, 1>, scalar_prefetch = 0 : i64, scratch_operands = 0 : i64, tpu.core_type = #tpu.core_type<tc>, window_params = [{transform_indices = @transform_0, window_bounds = array<i64: 1, 4, 256>}, {pipeline_mode = #tpu.pipeline_mode<synchronous>, transform_indices = @transform_1, window_bounds = array<i64: 32, 4>}, {pipeline_mode = #tpu.pipeline_mode<synchronous>, transform_indices = @transform_2, window_bounds = array<i64: 32, 1>}, {pipeline_mode = #tpu.pipeline_mode<synchronous>, transform_indices = @transform_3, window_bounds = array<i64: 4, 32>}, {pipeline_mode = #tpu.pipeline_mode<synchronous>, transform_indices = @transform_4, window_bounds = array<i64: 4, 1>}, {transform_indices = @transform_5, window_bounds = array<i64: 1, 4, 256>}]} {
    %c0 = arith.constant 0 : index
    %c0_0 = arith.constant 0 : index
    %0 = vector.load %arg3[%c0, %c0_0] : memref<32x4xf32, #tpu.memory_space<vmem>>, vector<32x4xf32>
    %c0_1 = arith.constant 0 : index
    %c0_2 = arith.constant 0 : index
    %1 = vector.load %arg5[%c0_1, %c0_2] : memref<4x32xf32, #tpu.memory_space<vmem>>, vector<4x32xf32>
    %c0_3 = arith.constant 0 : index
    %c0_4 = arith.constant 0 : index
    %2 = vector.load %arg4[%c0_3, %c0_4] : memref<32x1xf32, #tpu.memory_space<vmem>>, vector<32x1xf32>
    %c0_5 = arith.constant 0 : index
    %c0_6 = arith.constant 0 : index
    %3 = vector.load %arg6[%c0_5, %c0_6] : memref<4x1xf32, #tpu.memory_space<vmem>>, vector<4x1xf32>
    %c0_7 = arith.constant 0 : index
    %c0_8 = arith.constant 0 : index
    %c0_9 = arith.constant 0 : index
    %4 = vector.load %arg2[%c0_7, %c0_8, %c0_9] : memref<1x4x256xf32, #tpu.memory_space<vmem>>, vector<1x4x256xf32>
    %5 = vector.shape_cast %4 : vector<1x4x256xf32> to vector<4x256xf32>
    %cst = arith.constant dense<0.000000e+00> : vector<32x256xf32>
    %6 = tpu.matmul %0, %5, %cst {dimension_numbers = #tpu.dot_dimension_numbers<[1], [0], [0], [1], [0, 0, 1, 1], [], []>} : vector<32x4xf32>, vector<4x256xf32>, vector<32x256xf32> -> vector<32x256xf32>
    %7 = vector.broadcast %2 : vector<32x1xf32> to vector<32x256xf32>
    %8 = arith.addf %6, %7 : vector<32x256xf32>
    %cst_10 = arith.constant 5.000000e-01 : f32
    %9 = vector.broadcast %cst_10 : f32 to vector<32x256xf32>
    %10 = arith.mulf %9, %8 : vector<32x256xf32>
    %cst_11 = arith.constant 0.707106769 : f32
    %11 = vector.broadcast %cst_11 : f32 to vector<32x256xf32>
    %12 = arith.mulf %8, %11 : vector<32x256xf32>
    %13 = math.erf %12 : vector<32x256xf32>
    %cst_12 = arith.constant 1.000000e+00 : f32
    %14 = vector.broadcast %cst_12 : f32 to vector<32x256xf32>
    %15 = arith.addf %14, %13 : vector<32x256xf32>
    %16 = arith.mulf %10, %15 : vector<32x256xf32>
    %cst_13 = arith.constant dense<0.000000e+00> : vector<4x256xf32>
    %17 = tpu.matmul %1, %16, %cst_13 {dimension_numbers = #tpu.dot_dimension_numbers<[1], [0], [0], [1], [0, 0, 1, 1], [], []>} : vector<4x32xf32>, vector<32x256xf32>, vector<4x256xf32> -> vector<4x256xf32>
    %18 = vector.broadcast %3 : vector<4x1xf32> to vector<4x256xf32>
    %19 = arith.addf %17, %18 : vector<4x256xf32>
    %20 = arith.addf %19, %5 : vector<4x256xf32>
    %c0_14 = arith.constant 0 : index
    %c0_15 = arith.constant 0 : index
    %c0_16 = arith.constant 0 : index
    %21 = vector.load %arg7[%c0_14, %c0_15, %c0_16] : memref<1x4x256xf32, #tpu.memory_space<vmem>>, vector<1x4x256xf32>
    %22 = vector.shape_cast %21 : vector<1x4x256xf32> to vector<4x256xf32>
    %23 = vector.shape_cast %20 : vector<4x256xf32> to vector<1x4x256xf32>
    tpu.vector_store %arg7[%c0_14, %c0_15, %c0_16], %23 {strides = array<i32>} : memref<1x4x256xf32, #tpu.memory_space<vmem>>, vector<1x4x256xf32>,
    return
  }
  func.func @transform_0(%arg0: i32, %arg1: i32) -> (i32, i32, i32) {
    %c0_i32 = arith.constant 0 : i32
    %c0_i32_0 = arith.constant 0 : i32
    return %arg0, %c0_i32, %arg1 : i32, i32, i32
  }
  func.func @transform_1(%arg0: i32, %arg1: i32) -> (i32, i32) {
    %c0_i32 = arith.constant 0 : i32
    %c0_i32_0 = arith.constant 0 : i32
    %c0_i32_1 = arith.constant 0 : i32
    return %c0_i32, %c0_i32_0 : i32, i32
  }
  func.func @transform_2(%arg0: i32, %arg1: i32) -> (i32, i32) {
    %c0_i32 = arith.constant 0 : i32
    %c0_i32_0 = arith.constant 0 : i32
    %c0_i32_1 = arith.constant 0 : i32
    return %c0_i32, %c0_i32_0 : i32, i32
  }
  func.func @transform_3(%arg0: i32, %arg1: i32) -> (i32, i32) {
    %c0_i32 = arith.constant 0 : i32
    %c0_i32_0 = arith.constant 0 : i32
    %c0_i32_1 = arith.constant 0 : i32
    return %c0_i32, %c0_i32_0 : i32, i32
  }
  func.func @transform_4(%arg0: i32, %arg1: i32) -> (i32, i32) {
    %c0_i32 = arith.constant 0 : i32
    %c0_i32_0 = arith.constant 0 : i32
    %c0_i32_1 = arith.constant 0 : i32
    return %c0_i32, %c0_i32_0 : i32, i32
  }
  func.func @transform_5(%arg0: i32, %arg1: i32) -> (i32, i32, i32) {
    %c0_i32 = arith.constant 0 : i32
    %c0_i32_0 = arith.constant 0 : i32
    return %arg0, %c0_i32, %arg1 : i32, i32, i32
  }
}

</mosaic_0001>

<bundles_post_ra>
// kernel: tpu_custom_call.1
= control target key start
LH: loop header
LB: loop body
LE: loop exit
PB: predicated region body
PF: predicated region fallthrough
CT: control target
= control target key end

     0   :  { %10 = vsyncpa [#allocation3], 0  ;;  %s986_s0 = inlined_call_operand.vmem [shape: f32[2,4,256], index: 0, kind: input, shape index: {}]   ;;  %s987_s1 = inlined_call_operand.vmem [shape: f32[32,4], index: 1, kind: input, shape index: {}]   ;;  %s988_s2 = inlined_call_operand.vmem [shape: f32[32,1], index: 2, kind: input, shape index: {}]   ;;  %s989_s3 = inlined_call_operand.vmem [shape: f32[4,32], index: 3, kind: input, shape index: {}]   ;;  %s990_s4 = inlined_call_operand.vmem [shape: f32[4,1], index: 4, kind: input, shape index: {}]   ;;  %s991_s5 = inlined_call_operand.hbm [shape: f32[2,4,256], index: 5, kind: output, shape index: {}]  }
   0x1   :  { %12 = vsyncpa [#allocation3 + $0x1], 0  ;;  %s834_s18 = smov 0   ;;  %s836_s19 = smov 0  }
   0x2   :  { %s838_s20 = smov 0   ;;  %s840_s21 = smov 0  }
   0x3   :  { %s842_s22 = smov 0   ;;  %s844_s23 = smov 0  }
   0x4 LB: > { %s615_s24 = sadd.s32 4294967295, %s799_s23   ;;  %s616_s25 = sadd.s32 4294967294, %s799_s23   ;;  %s799_s23 = sphi %s844_s23, %s18_s23   ;;  %s795_s22 = sphi %s842_s22, %s998_s22   ;;  %s791_s21 = sphi %s840_s21, %s997_s21   ;;  %s787_s20 = sphi %s838_s20, %s996_s20   ;;  %s783_s19 = sphi %s836_s19, %s995_s19   ;;  %s779_s18 = sphi %s834_s18, %s994_s18  }
   0x5   : > { %s30_s26 = sadd.s32 1, %s795_s22  ;;  %s151_s27 = sadd.s32 1, %s787_s20 }
   0x6   : > { %p32_p0 = scmp.ge.s32.totalorder %s30_s26, 2  ;;  %p161_p1 = scmp.ne.s32.totalorder %s787_s20, %s783_s19 }
   0x7   : > { %p162_p2 = scmp.eq.s32.totalorder %s615_s24, 1  ;;  %p167_p3 = scmp.ne.s32.totalorder %s783_s19, %s779_s18 }
   0x8   : > { %s1000_s26 = smov (%p32_p0, %s30_s26), 0  ;;  %p168_p5 = scmp.eq.s32.totalorder %s616_s25, 1 }
   0x9   : > { %p874_p4 = por %p162_p2, %p161_p1  ;;  %s146_s29 = ssub.s32 %s795_s22, %s1000_s26 }
   0xa   : > { %p619_p6 = scmp.ge.s32.totalorder %s799_s23, 1  ;;  %p149_p7 = scmp.eq.s32.totalorder %s146_s29, 0 }
   0xb   : > { %p881_p8 = por %p168_p5, %p167_p3  ;;  %p211_p9 = scmp.lt.s32.totalorder %s799_s23, 3 }
   0xc   : > { %s887_s6 = scalar_select %p149_p7, %s787_s20, %s151_s27  }
   0xd   : > { %p212_p10 = pnand %p619_p6, %p211_p9 }
   0xe   : > { %p244_p11 = scmp.lt.s32.totalorder (!%p212_p10), %s791_s21, 1  ;;  %v801_v0 = vmov (!%p212_p10), 0.0   ;;  %v259_v1 = vld [vmem:[%s988_s2] sm:$0xff] (!%p212_p10)  ;;  %v802_v2 = vmov (!%p212_p10), 0   ;;  %v261_v3 = vld [vmem:[%s988_s2 + $0x10] sm:$0xff] (!%p212_p10)  ;;  %v260_v4 = vld [vmem:[%s988_s2 + $0x8] sm:$0xff] (!%p212_p10) }
   0xf   : > { %215 = sbr.rel (%p212_p10) target bundleno = 514 (0x202), region = 40  ;;  %369 = vmatprep.mubr.f32.mxu0 (!%p212_p10), %v801_v0  ;;  %507 = vmatprep.mubr.f32.mxu1 (!%p212_p10), %v801_v0  ;;  %v262_v5 = vld [vmem:[%s988_s2 + $0x18] sm:$0xff] (!%p212_p10)  ;;  %vm300_vm0 = vcmask (!%p212_p10), 1043456   ;;  %v254_v8 = vld [vmem:[%s987_s1] sm:$0xff] (!%p212_p10)  ;;  %vm287_vm1 = vcmask (!%p212_p10), 31744   ;;  %v255_v10 = vld [vmem:[%s987_s1 + $0x8] sm:$0xff] (!%p212_p10) }
  0x10   : > { %702 = vset.pattern.permute.xlu0 (!%p212_p10), %v802_v2  ;;  %703 = vset.pattern.permute.xlu1 (!%p212_p10), %v802_v2  ;;  %v263_v9 = vld [vmem:[%s990_s4] sm:$0xf] (!%p212_p10)  ;;  %v256_v11 = vld [vmem:[%s987_s1 + $0x10] sm:$0xff] (!%p212_p10)  ;;  %v257_v12 = vld [vmem:[%s987_s1 + $0x18] sm:$0xff] (!%p212_p10)  ;;  %vm439_vm2 = vcmask (!%p212_p10), 261120   ;;  %s240_s17 = sand.u32 (!%p212_p10), 1, %s783_s19  }
  0x11   : > { %267 = vperm.xlu0 (!%p212_p10), %702, %v259_v1   ;;  %277 = vperm.xlu1 (!%p212_p10), %703, %v261_v3   ;;  %s620_s24 = sshll.u32 (!%p212_p10), %s240_s17, 3  ;;  %s523_s10 = scalar_lea.sflag (!%p212_p10), [#allocation3], %s240_s17 }
  0x12   : > { %s242_s27 = scalar_lea.vmem (!%p212_p10), [#allocation2], %s620_s24 }
  0x13   : > { %s539_s29 = sshll.u32 (!%p212_p10), %s242_s27, 4  ;;  %s941_s29 = int_to_ptr.vmem [resolvable:$true] %s539_s29 }
  0x14   : > { %s721_s11 = scalar_lea.vmem (!%p212_p10), %s941_s29, 128 }
  0x15   : > { %272 = vperm.xlu0 (!%p212_p10), %702, %v260_v4   ;;  %282 = vperm.xlu1 (!%p212_p10), %703, %v262_v5   ;;  %p722_p12 = scmp.ne.s32.totalorder (!%p212_p10), %s941_s29, %s721_s11 }
  0x16   : > { %s245_s9 = scalar_select %p244_p11, %s791_s21, 1 }
  0x17   : > { %p723_p13 = pnand %p722_p12, %p874_p4 }
  0x18   : > { %s635_s12 = sshll.u32 %s245_s9, 3 }
  0x19   : > { %s251_s25 = scalar_lea.vmem %s986_s0, %s635_s12  ;;  %436 = vperm.xlu0 %702, %v263_v9   ;;  %p724_p0 = pneg %p723_p13 }
  0x1a   : > { %v906_v6 = vld [vmem:[%s251_s25] sm:$0xff]  ;;  %s636_s25 = sshll.u32 %s791_s21, 7  ;;  %s803_s21 = smov [#allocation2]  }
  0x1b   : > { %v910_v7 = vcombine.high %v906_v6, %v906_v6  ;;  %s939_s9 = scalar_lea.hbm %s991_s5, %s636_s25  ;;  %s725_s12 = sshll.u32 %s803_s21, 4  ;;  %s726_s12 = int_to_ptr.vmem [resolvable:$false] %s725_s12 }
  0x1c   : > { %s727_s13 = scalar_lea.vmem %s726_s12, 256  ;;  %p728_p1 = scmp.lt.s32.totalorder %s941_s29, %s726_s12 }
  0x1d   : > { %623 = vmatprep.subr.msk.mxu0 %vm300_vm0, %v910_v7  ;;  %p729_p2 = scmp.lt.s32.totalorder %s727_s13, %s721_s11 }
  0x1e   : > { %624 = vmatpush1.msk.msra.mxu0 %vm300_vm0, %v906_v6 }
  0x1f   : > { %625 = vmatmul.mubr.msk.f32.vlgmr.msra.gmra.mrb[0].mxu0 %vm287_vm1, %v254_v8  ;;  %p730_p3 = por %p729_p2, %p728_p1 }
  0x20   : > { %375 = vmatprep.mubr.f32.mxu0 %v801_v0 }
  0x21   : > { %p731_p5 = pnand %p730_p3, %p724_p0 }
  0x23   : > { %626 = vmatmul.mubr.msk.f32.gmra.mrb[2].mxu0 %vm287_vm1, %v255_v10 }
  0x24   : > { %381 = vmatprep.mubr.f32.mxu0 %v801_v0 }
  0x27   : > { %627 = vmatmul.mubr.msk.f32.gmra.mrb[4].mxu0 %vm287_vm1, %v256_v11 }
  0x28   : > { %387 = vmatprep.mubr.f32.mxu0 %v801_v0 }
  0x2b   : > { %628 = vmatmul.mubr.msk.f32.gmra.mrb[6].mxu0 %vm287_vm1, %v257_v12 }
  0x90   : > { %v268_v13 = vpop.permute.xlu0 %267  ;;  %v278_v24 = vpop.permute.xlu1 %277 }
  0x94   : > { %v273_v19 = vpop.permute.xlu0 %272  ;;  %v283_v33 = vpop.permute.xlu1 %282 }
  0xf2   : > { %v371_v14 = vpop.f32.mrb[0].mxu0 }
  0xf3   : > { %v372_v15 = vadd.f32 %v371_v14, %v268_v13  ;;  %v373_v16 = vpop.f32.mrb[1].mxu0 }
  0xf4   : > { %v374_v17 = vadd.f32 %v373_v16, %v268_v13  ;;  %v437_v16 = vpop.permute.xlu0 %436 }
  0xf5   : > { %v402_v18 = vmul.f32 0.70710677, %v372_v15  ;;  %v394_v47 = vmul.f32 0.5, %v372_v15  ;;  %v258_v15 = vld [vmem:[%s989_s3] sm:$0xf] }
  0xf6   : > { %v403_v20 = vmul.f32 0.70710677, %v374_v17  ;;  %v377_v21 = vpop.f32.mrb[2].mxu0  ;;  %v395_v50 = vmul.f32 0.5, %v374_v17 }
  0xf7   : > { %705 = verf.f32 %v402_v18  ;;  %v378_v22 = vadd.f32 %v377_v21, %v273_v19  ;;  %v379_v23 = vpop.f32.mrb[3].mxu0 }
  0xf8   : > { %707 = verf.f32 %v403_v20  ;;  %v380_v25 = vadd.f32 %v379_v23, %v273_v19 }
  0xf9   : > { %v404_v26 = vmul.f32 0.70710677, %v378_v22  ;;  %v396_v48 = vmul.f32 0.5, %v378_v22 }
  0xfa   : > { %v405_v27 = vmul.f32 0.70710677, %v380_v25  ;;  %v383_v28 = vpop.f32.mrb[4].mxu0  ;;  %v397_v51 = vmul.f32 0.5, %v380_v25 }
  0xfb   : > { %709 = verf.f32 %v404_v26  ;;  %v384_v29 = vadd.f32 %v383_v28, %v278_v24  ;;  %v385_v30 = vpop.f32.mrb[5].mxu0 }
  0xfc   : > { %711 = verf.f32 %v405_v27  ;;  %v386_v31 = vadd.f32 %v385_v30, %v278_v24 }
  0xfd   : > { %v406_v32 = vmul.f32 0.70710677, %v384_v29  ;;  %v398_v1 = vmul.f32 0.5, %v384_v29 }
  0xfe   : > { %v407_v34 = vmul.f32 0.70710677, %v386_v31  ;;  %v389_v35 = vpop.f32.mrb[6].mxu0  ;;  %v399_v4 = vmul.f32 0.5, %v386_v31 }
  0xff   : > { %713 = verf.f32 %v406_v32  ;;  %v390_v36 = vadd.f32 %v389_v35, %v283_v33  ;;  %v391_v37 = vpop.f32.mrb[7].mxu0 }
 0x100   : > { %715 = verf.f32 %v407_v34  ;;  %v392_v38 = vadd.f32 %v391_v37, %v283_v33 }
 0x101   : > { %v706_v39 = vpop.eup %705  ;;  %v408_v40 = vmul.f32 0.70710677, %v390_v36  ;;  %v400_v2 = vmul.f32 0.5, %v390_v36 }
 0x102   : > { %v708_v41 = vpop.eup %707  ;;  %v409_v42 = vmul.f32 0.70710677, %v392_v38  ;;  %v418_v43 = vadd.f32 1.0, %v706_v39  ;;  %v401_v5 = vmul.f32 0.5, %v392_v38 }
 0x103   : > { %717 = verf.f32 %v408_v40  ;;  %v419_v45 = vadd.f32 1.0, %v708_v41 }
 0x104   : > { %719 = verf.f32 %v409_v42  ;;  %v426_v53 = vmul.f32 %v418_v43, %v394_v47 }
 0x105   : > { %v710_v44 = vpop.eup %709  ;;  %v427_v56 = vmul.f32 %v419_v45, %v395_v50 }
 0x106   : > { %v712_v46 = vpop.eup %711  ;;  %v420_v49 = vadd.f32 1.0, %v710_v44 }
 0x107   : > { %v421_v52 = vadd.f32 1.0, %v712_v46 }
 0x108   : > { %v428_v54 = vmul.f32 %v420_v49, %v396_v48 }
 0x109   : > { %v714_v55 = vpop.eup %713  ;;  %v429_v57 = vmul.f32 %v421_v52, %v397_v51 }
 0x10a   : > { %v716_v58 = vpop.eup %715  ;;  %v639_v59 = vpack.c.bf16 %v428_v54, %v426_v53  ;;  %v422_v61 = vadd.f32 1.0, %v714_v55 }
 0x10b   : > { %v637_v60 = vpack.c.bf16 %v429_v57, %v427_v56  ;;  %v423_v63 = vadd.f32 1.0, %v716_v58 }
 0x10c   : > { %v430_v9 = vmul.f32 %v422_v61, %v398_v1 }
 0x10d   : > { %v718_v62 = vpop.eup %717  ;;  %638 = vmatprep.subr.bf16.mxu1 %v637_v60  ;;  %v431_v11 = vmul.f32 %v423_v63, %v399_v4 }
 0x10e   : > { %v720_v0 = vpop.eup %719  ;;  %v424_v3 = vadd.f32 1.0, %v718_v62  ;;  %640 = vmatpush1.bf16.msra.mxu1 %v639_v59 }
 0x10f   : > { %v425_v8 = vadd.f32 1.0, %v720_v0 }
 0x110   : > { %v432_v10 = vmul.f32 %v424_v3, %v400_v2 }
 0x111   : > { %v433_v12 = vmul.f32 %v425_v8, %v401_v5 }
 0x112   : > { %v643_v13 = vpack.c.bf16 %v432_v10, %v430_v9 }
 0x113   : > { %v641_v14 = vpack.c.bf16 %v433_v12, %v431_v11 }
 0x115   : > { %642 = vmatprep.subr.bf16.mxu1 %v641_v14 }
 0x116   : > { %644 = vmatpush1.bf16.msra.mxu1 %v643_v13 }
 0x119   : > { %629 = vmatmul.mubr.msk.f32.vlgmr.msra.gmra.mrb[0].mxu1 %vm439_vm2, %v258_v15 }
 0x1ec   : > { %v509_v17 = vpop.f32.mrb[0].mxu1 }
 0x1ed   : > { %v510_v18 = vadd.f32 %v509_v17, %v437_v16  ;;  %v511_v19 = vpop.f32.mrb[1].mxu1 }
 0x1ee   : > { %v512_v20 = vadd.f32 %v511_v19, %v437_v16 }
 0x1ef   : > { %v515_v21 = vadd.f32 %v510_v18, %v906_v6 }
 0x1f0   : > { %v516_v22 = vadd.f32 %v512_v20, %v910_v7 }
 0x1f2   : > { %v519_v23 = vcombine.low %v515_v21, %v516_v22 }
 0x1f4   : > { %521 = vst [vmem:[%s242_s27] sm:$0xff] %v519_v23 }
 0x1f5   : > { %734 = shalt.err (!%p731_p5)
}
 0x1f6   : > { %s735_s14 = scalar_lea.hbm %s939_s9, 128  ;;  %s739_s17 = scalar_lea.hbm %s991_s5, 256 }
 0x1f7   : > { %p736_p6 = scmp.ne.s32.totalorder %s939_s9, %s735_s14  ;;  %p740_p10 = scmp.lt.u32.totalorder %s939_s9, %s991_s5 }
 0x1f8   : > { %p741_p11 = scmp.lt.u32.totalorder %s739_s17, %s735_s14  ;;  %p743_p13 = scmp.lt.u32.totalorder %s735_s14, %s939_s9 }
 0x1f9   : > { %p737_p7 = pnand %p736_p6, %p874_p4 }
 0x1fa   : > { %p742_p12 = por %p741_p11, %p740_p10 }
 0x1fb   : > { %p738_p9 = pneg %p737_p7 }
 0x1fc   : > { %p744_p0 = por %p743_p13, %p742_p12 }
 0x1fe   : > { %p745_p1 = pnand %p744_p0, %p738_p9 }
 0x200   : > { %748 = shalt.err (!%p745_p1)
}
 0x201   : > { %645 = dma.vmem_to_hbm [thread:$0]  (%p874_p4), %s941_s29, 128, %s939_s9, %s523_s10  }
 0x202 PF: > { %p651_p2 = scmp.ge.s32.totalorder %s799_s23, 2  ;;  %s551_s27 = sand.u32 1, %s779_s18  }
 0x203   : > { %s552_s7 = scalar_lea.sflag [#allocation3], %s551_s27 }
 0x204   : > { %p648_p3 = pnand %p651_p2, %p881_p8 }
 0x206   : > { %774 = dma.done.wait (!%p648_p3), %s552_s7, 128  }
 0x207   : > { %776 = vsyncadd (!%p648_p3), %s552_s7, 4294967168  ;;  %s18_s23 = sadd.s32 1, %s799_s23   ;;  %s994_s18 = smov %s783_s19 }
 0x208   : > { %p15_p5 = scmp.ge.s32.totalorder %s18_s23, 4   ;;  %s995_s19 = smov %s787_s20 }
 0x209   : > { %s996_s20 = smov %s887_s6  ;;  %s997_s21 = smov %s795_s22 }
 0x20a   : > { %s998_s22 = smov %s1000_s26  ;;  %17 = sbr.rel (!%p15_p5) target bundleno = 4 (0x4), region = 75 }
 0x211   :  { %557 = vsyncpa [#allocation3], 1 }
 0x212   :  { %559 = vsyncpa [#allocation3 + $0x1], 1 }

</bundles_post_ra>
